<compile_context>
chip_gen: v6e
topology: v6e:2x2x1
jax: 0.10.0
libtpu: 0.0.40
codegen_flags: <defaults>
</compile_context>

<pallas_src>
import functools

import jax
import jax.numpy as jnp
from jax.experimental import pallas as pl
from jax.experimental.pallas import tpu as pltpu


def _conv1d_block_kernel(x_ref, w_ref, b_ref, g_ref, be_ref, s_ref, gm_ref, o_ref,
                         *, n_groups, eps, seg_len):
    """One grid step processes `batch_block` samples fused along the lane axis.

    x_ref:  (1, C_in, batch_block*seg_len)  per-sample zero-padded input slabs
                                            (compute dtype, packed by the wrapper)
    w_ref:  (K, C_out, C_in)                conv weights per tap (compute dtype)
    b_ref:  (C_out, 1)  f32                 conv bias
    g_ref:  (C_out, 1)  f32                 GroupNorm gamma
    be_ref: (C_out, 1)  f32                 GroupNorm beta
    s_ref:  (n_cols, batch_block) f32       0/1 selector of each sample's valid columns
    gm_ref: (C_out, C_out) f32              same-group indicator matrix
    o_ref:  (batch_block, C_out, L_out)     output (NCL layout, L on lanes)
    """
    bb, C_out, L_out = o_ref.shape
    K = w_ref.shape[0]
    n_cols = s_ref.shape[0]                       # == bb*seg_len - (K-1)
    group_size = C_out // n_groups

    # ---- Conv1d: K accumulating MXU matmuls over statically shifted ref views ----
    # (no im2col temp, no halo copies; the per-sample zero padding already lives
    #  in the input slab, so shifted views need no masking at all).
    acc = jnp.dot(w_ref[0], x_ref[0, :, 0:n_cols],
                  preferred_element_type=jnp.float32)
    for k in range(1, K):
        acc = acc + jnp.dot(w_ref[k], x_ref[0, :, k:k + n_cols],
                            preferred_element_type=jnp.float32)
    # acc: (C_out, n_cols) f32.  Sample b's outputs live in columns
    # [b*seg_len, b*seg_len + L_out); the K-1 columns between samples are garbage
    # (they mix adjacent samples' padding) and are excluded by the selector below
    # and never stored.

    # ---- GroupNorm statistics on the MXU (idle during the epilogue anyway) ----
    sel = s_ref[...]                                                      # (n_cols, bb)
    row_s = jnp.dot(acc, sel, preferred_element_type=jnp.float32)         # (C_out, bb)
    row_ss = jnp.dot(acc * acc, sel, preferred_element_type=jnp.float32)  # (C_out, bb)

    # Fold the conv bias analytically (per-channel scalar fixups only — the bias
    # is never added to the full (C_out, n_cols) tile).
    bias = b_ref[...]                                                     # (C_out, 1)
    cnt = jnp.float32(L_out)
    sum_z = row_s + cnt * bias                            # sum of (conv + bias)
    sum_z2 = row_ss + (2.0 * bias) * row_s + cnt * (bias * bias)

    # Segmented group sum AND broadcast back to channels in ONE tiny matmul:
    # gm[c, c'] = 1 iff channel c' is in channel c's group.
    stats = jnp.concatenate([sum_z, sum_z2], axis=1)                      # (C_out, 2*bb)
    gstats = jnp.dot(gm_ref[...], stats, preferred_element_type=jnp.float32)
    inv_n = jnp.float32(1.0 / (L_out * group_size))
    mean_c = gstats[:, :bb] * inv_n                                       # (C_out, bb)
    var_c = gstats[:, bb:] * inv_n - mean_c * mean_c
    inv_c = jax.lax.rsqrt(var_c + jnp.float32(eps))

    # Folded affine: y = acc*scale + shift (conv bias + GroupNorm affine all live
    # in the per-(channel, sample) shift).
    scale_c = inv_c * g_ref[...]                                          # (C_out, bb)
    shift_c = be_ref[...] + (bias - mean_c) * scale_c                     # (C_out, bb)

    # ---- per-sample scale/shift + SiLU (single EUP tanh) + store ----
    # TODO(synk): if batch_block is ever made large, switch this to lax.fori_loop
    # with ref-based dynamic slices; for bb <= 8 the static unroll is what
    # unroll=bb would emit and each iteration's temps die at its store.
    for b in range(bb):
        y = (acc[:, b * seg_len:b * seg_len + L_out] * scale_c[:, b:b + 1]
             + shift_c[:, b:b + 1])
        h = 0.5 * y
        o_ref[b] = (h * (jnp.tanh(h) + 1.0)).astype(o_ref.dtype)   # y*sigmoid(y)


def conv1d_block(x, weight, bias, gamma, beta, *, n_groups=8, eps=1e-5,
                 compute_dtype=jnp.bfloat16, out_dtype=None, batch_block=None):
    """Fused Conv1d(padding=K//2) -> GroupNorm(n_groups) -> SiLU.

    x:      (B, C_in, L)      PyTorch NCL layout
    weight: (C_out, C_in, K)  PyTorch Conv1d layout
    bias, gamma, beta: (C_out,)
    Returns (B, C_out, L_out) with L_out = L + 2*(K//2) - K + 1 (== L for odd K).
    `compute_dtype` is the MXU input dtype (bf16 fast path / f32 exact path);
    normalisation & SiLU math is always f32.
    """
    B, C_in, L = x.shape
    C_out, C_in_w, K = weight.shape
    if C_in_w != C_in:
        raise ValueError(f"weight C_in {C_in_w} != input C_in {C_in}")
    if C_out % n_groups != 0:
        raise ValueError(f"C_out={C_out} not divisible by n_groups={n_groups}")

    pad = K // 2
    seg = L + 2 * pad              # per-sample zero-padded segment length
    L_out = seg - K + 1
    out_dtype = x.dtype if out_dtype is None else out_dtype

    # ---- generation-aware VMEM budget (leave headroom for compiler scratch) ----
    try:
        cap = int(pltpu.get_tpu_info().vmem_capacity_bytes)
    except Exception:
        cap = 64 * 1024 * 1024                      # assume the smallest (v7x/TC)
    vmem_budget = max(32 * 1024 * 1024, min(64 * 1024 * 1024, (3 * cap) // 4))

    csz = jnp.dtype(compute_dtype).itemsize
    osz = jnp.dtype(out_dtype).itemsize

    def _vmem_estimate(d):
        cols = d * seg - (K - 1)
        in_block = C_in * d * seg * csz
        out_block = d * C_out * L_out * osz
        params = K * C_out * C_in * csz + (3 * C_out + cols * d + C_out * C_out) * 4
        temps = (2 * C_out * cols + 3 * C_out * L_out) * 4 + C_in * cols * csz
        return 2 * (in_block + out_block + params) + temps   # 2x for double-buffering

    if batch_block is None:
        batch_block = 1
        for d in (8, 4, 2, 1):
            if B % d != 0:
                continue
            if B >= 2 and B // d < 2:        # keep >= 2 grid steps for multi-TC chips
                continue
            if _vmem_estimate(d) <= (3 * vmem_budget) // 4:
                batch_block = d
                break
    if B % batch_block != 0:
        raise ValueError(f"batch_block={batch_block} must divide B={B}")
    bb = batch_block
    nb = B // bb
    n_cols = bb * seg - (K - 1)

    # ---- single wrapper-side repack (pad + transpose + cast, fused by XLA) ----
    # The kernel then needs no in-kernel copies at all, and its input DMA is
    # already in the compute dtype (bf16 by default -> half the input bytes).
    x_in = jnp.pad(x, ((0, 0), (0, 0), (pad, pad)))            # (B, C_in, seg)
    x_in = (x_in.reshape(nb, bb, C_in, seg)
                 .transpose(0, 2, 1, 3)
                 .reshape(nb, C_in, bb * seg)
                 .astype(compute_dtype))

    w_taps = jnp.transpose(weight, (2, 0, 1)).astype(compute_dtype)   # (K, C_out, C_in)
    b2 = bias.reshape(C_out, 1).astype(jnp.float32)
    g2 = gamma.reshape(C_out, 1).astype(jnp.float32)
    be2 = beta.reshape(C_out, 1).astype(jnp.float32)

    # 0/1 selector of each sample's valid output columns (for the MXU row sums).
    col = jnp.arange(n_cols)[:, None]
    smp = jnp.arange(bb)[None, :]
    sel = ((col >= smp * seg) & (col < smp * seg + L_out)).astype(jnp.float32)

    # Same-group indicator matrix (segmented sum + broadcast-back in one matmul).
    gidx = jnp.arange(C_out) // (C_out // n_groups)
    gmat = (gidx[:, None] == gidx[None, :]).astype(jnp.float32)

    kernel = functools.partial(_conv1d_block_kernel, n_groups=n_groups, eps=eps,
                               seg_len=seg)

    out = pl.pallas_call(
        kernel,
        out_shape=jax.ShapeDtypeStruct((B, C_out, L_out), out_dtype),
        grid_spec=pltpu.PrefetchScalarGridSpec(
            num_scalar_prefetch=0,
            grid=(nb,),
            in_specs=[
                pl.BlockSpec((1, C_in, bb * seg), lambda i: (i, 0, 0)),
                pl.BlockSpec((K, C_out, C_in), lambda i: (0, 0, 0)),
                pl.BlockSpec((C_out, 1), lambda i: (0, 0)),
                pl.BlockSpec((C_out, 1), lambda i: (0, 0)),
                pl.BlockSpec((C_out, 1), lambda i: (0, 0)),
                pl.BlockSpec((n_cols, bb), lambda i: (0, 0)),
                pl.BlockSpec((C_out, C_out), lambda i: (0, 0)),
            ],
            out_specs=pl.BlockSpec((bb, C_out, L_out), lambda i: (i, 0, 0)),
        ),
        compiler_params=pltpu.CompilerParams(
            dimension_semantics=("parallel",),
            vmem_limit_bytes=vmem_budget,
        ),
    )(x_in, w_taps, b2, g2, be2, sel, gmat)
    # TODO(synk): for very long L on v7x (64 MiB VMEM/TC), add an L-tile grid axis
    # with a (K-1) halo and a two-pass GroupNorm (stats carried across an
    # 'arbitrary' L axis) instead of holding the full length per grid step.
    return out


def _reference(x, weight, bias, gamma, beta, n_groups=8, eps=1e-5):
    """Pure-JAX f32 reference matching PyTorch Conv1d -> GroupNorm -> SiLU."""
    K = weight.shape[2]
    pad = K // 2
    y = jax.lax.conv_general_dilated(
        x, weight, window_strides=(1,), padding=[(pad, pad)],
        dimension_numbers=("NCH", "OIH", "NCH"))
    y = y + bias[None, :, None]
    B, C, L = y.shape
    yg = y.reshape(B, n_groups, C // n_groups, L)
    mean = yg.mean(axis=(2, 3), keepdims=True)
    var = yg.var(axis=(2, 3), keepdims=True)
    yn = ((yg - mean) / jnp.sqrt(var + eps)).reshape(B, C, L)
    yn = yn * gamma[None, :, None] + beta[None, :, None]
    return yn * jax.nn.sigmoid(yn)


if __name__ == "__main__":
    def _run_case(seed, B, C_in, C_out, L, K, G, compute_dtype, atol, rtol):
        key = jax.random.fold_in(jax.random.PRNGKey(0), seed)
        kx, kw, kb, kg, kbe = jax.random.split(key, 5)
        x = jax.random.normal(kx, (B, C_in, L), dtype=jnp.float32)
        weight = 0.1 * jax.random.normal(kw, (C_out, C_in, K), dtype=jnp.float32)
        bias = 0.1 * jax.random.normal(kb, (C_out,), dtype=jnp.float32)
        gamma = 1.0 + 0.1 * jax.random.normal(kg, (C_out,), dtype=jnp.float32)
        beta = 0.1 * jax.random.normal(kbe, (C_out,), dtype=jnp.float32)

        ref = _reference(x, weight, bias, gamma, beta, n_groups=G)
        out = conv1d_block(x, weight, bias, gamma, beta, n_groups=G,
                           compute_dtype=compute_dtype)
        out = jax.block_until_ready(out)
        assert out.shape == ref.shape, (out.shape, ref.shape)
        out32 = out.astype(jnp.float32)
        err = float(jnp.max(jnp.abs(out32 - ref)))
        assert bool(jnp.allclose(out32, ref, atol=atol, rtol=rtol)), (
            f"case seed={seed} compute={jnp.dtype(compute_dtype).name}: "
            f"max abs err {err}")

    # bf16 MXU fast path and exact f32 path at the main shape
    # (B=4 -> batch_block=2 -> 2 grid steps; kernel_size=5 exercises pad=2).
    _run_case(0, 4, 8, 32, 64, 5, 8, jnp.bfloat16, 5e-2, 5e-2)
    _run_case(0, 4, 8, 32, 64, 5, 8, jnp.float32, 1e-3, 1e-3)
    # Smaller / odd config: batch_block=1 (2 grid steps), kernel_size=3, 4 groups.
    _run_case(1, 2, 4, 16, 16, 3, 4, jnp.float32, 1e-3, 1e-3)
    print("KERNEL_OK")
</pallas_src>

<mosaic_0001>
module attributes {stable_mosaic.version = 11 : i64} {
  func.func @_conv1d_block_kernel(%arg0: i32, %arg1: memref<1x8x136xbf16, #tpu.memory_space<vmem>>, %arg2: memref<5x32x8xbf16, #tpu.memory_space<vmem>>, %arg3: memref<32x1xf32, #tpu.memory_space<vmem>>, %arg4: memref<32x1xf32, #tpu.memory_space<vmem>>, %arg5: memref<32x1xf32, #tpu.memory_space<vmem>>, %arg6: memref<132x2xf32, #tpu.memory_space<vmem>>, %arg7: memref<32x32xf32, #tpu.memory_space<vmem>>, %arg8: memref<2x32x64xf32, #tpu.memory_space<vmem>>) attributes {dimension_semantics = [#tpu.dimension_semantics<parallel>], iteration_bounds = array<i64: 2>, scalar_prefetch = 0 : i64, scratch_operands = 0 : i64, tpu.core_type = #tpu.core_type<tc>, window_params = [{transform_indices = @transform_0, window_bounds = array<i64: 1, 8, 136>}, {pipeline_mode = #tpu.pipeline_mode<synchronous>, transform_indices = @transform_1, window_bounds = array<i64: 5, 32, 8>}, {pipeline_mode = #tpu.pipeline_mode<synchronous>, transform_indices = @transform_2, window_bounds = array<i64: 32, 1>}, {pipeline_mode = #tpu.pipeline_mode<synchronous>, transform_indices = @transform_3, window_bounds = array<i64: 32, 1>}, {pipeline_mode = #tpu.pipeline_mode<synchronous>, transform_indices = @transform_4, window_bounds = array<i64: 32, 1>}, {pipeline_mode = #tpu.pipeline_mode<synchronous>, transform_indices = @transform_5, window_bounds = array<i64: 132, 2>}, {pipeline_mode = #tpu.pipeline_mode<synchronous>, transform_indices = @transform_6, window_bounds = array<i64: 32, 32>}, {transform_indices = @transform_7, window_bounds = array<i64: 2, 32, 64>}]} {
    %c0 = arith.constant 0 : index
    %c0_0 = arith.constant 0 : index
    %c0_1 = arith.constant 0 : index
    %0 = vector.load %arg2[%c0, %c0_0, %c0_1] : memref<5x32x8xbf16, #tpu.memory_space<vmem>>, vector<1x32x8xbf16>
    %1 = vector.shape_cast %0 : vector<1x32x8xbf16> to vector<32x8xbf16>
    %c0_2 = arith.constant 0 : index
    %c0_3 = arith.constant 0 : index
    %c0_4 = arith.constant 0 : index
    %2 = vector.load %arg1[%c0_2, %c0_3, %c0_4] : memref<1x8x136xbf16, #tpu.memory_space<vmem>>, vector<1x8x132xbf16>
    %3 = vector.shape_cast %2 : vector<1x8x132xbf16> to vector<8x132xbf16>
    %cst = arith.constant dense<0.000000e+00> : vector<32x132xf32>
    %4 = tpu.matmul %1, %3, %cst {dimension_numbers = #tpu.dot_dimension_numbers<[1], [0], [0], [1], [0, 0, 1, 1], [], []>} : vector<32x8xbf16>, vector<8x132xbf16>, vector<32x132xf32> -> vector<32x132xf32>
    %c1 = arith.constant 1 : index
    %c0_5 = arith.constant 0 : index
    %c0_6 = arith.constant 0 : index
    %5 = vector.load %arg2[%c1, %c0_5, %c0_6] : memref<5x32x8xbf16, #tpu.memory_space<vmem>>, vector<1x32x8xbf16>
    %6 = vector.shape_cast %5 : vector<1x32x8xbf16> to vector<32x8xbf16>
    %c0_7 = arith.constant 0 : index
    %c0_8 = arith.constant 0 : index
    %c1_9 = arith.constant 1 : index
    %7 = vector.load %arg1[%c0_7, %c0_8, %c1_9] : memref<1x8x136xbf16, #tpu.memory_space<vmem>>, vector<1x8x132xbf16>
    %8 = vector.shape_cast %7 : vector<1x8x132xbf16> to vector<8x132xbf16>
    %cst_10 = arith.constant dense<0.000000e+00> : vector<32x132xf32>
    %9 = tpu.matmul %6, %8, %cst_10 {dimension_numbers = #tpu.dot_dimension_numbers<[1], [0], [0], [1], [0, 0, 1, 1], [], []>} : vector<32x8xbf16>, vector<8x132xbf16>, vector<32x132xf32> -> vector<32x132xf32>
    %10 = arith.addf %4, %9 : vector<32x132xf32>
    %c2 = arith.constant 2 : index
    %c0_11 = arith.constant 0 : index
    %c0_12 = arith.constant 0 : index
    %11 = vector.load %arg2[%c2, %c0_11, %c0_12] : memref<5x32x8xbf16, #tpu.memory_space<vmem>>, vector<1x32x8xbf16>
    %12 = vector.shape_cast %11 : vector<1x32x8xbf16> to vector<32x8xbf16>
    %c0_13 = arith.constant 0 : index
    %c0_14 = arith.constant 0 : index
    %c2_15 = arith.constant 2 : index
    %13 = vector.load %arg1[%c0_13, %c0_14, %c2_15] : memref<1x8x136xbf16, #tpu.memory_space<vmem>>, vector<1x8x132xbf16>
    %14 = vector.shape_cast %13 : vector<1x8x132xbf16> to vector<8x132xbf16>
    %cst_16 = arith.constant dense<0.000000e+00> : vector<32x132xf32>
    %15 = tpu.matmul %12, %14, %cst_16 {dimension_numbers = #tpu.dot_dimension_numbers<[1], [0], [0], [1], [0, 0, 1, 1], [], []>} : vector<32x8xbf16>, vector<8x132xbf16>, vector<32x132xf32> -> vector<32x132xf32>
    %16 = arith.addf %10, %15 : vector<32x132xf32>
    %c3 = arith.constant 3 : index
    %c0_17 = arith.constant 0 : index
    %c0_18 = arith.constant 0 : index
    %17 = vector.load %arg2[%c3, %c0_17, %c0_18] : memref<5x32x8xbf16, #tpu.memory_space<vmem>>, vector<1x32x8xbf16>
    %18 = vector.shape_cast %17 : vector<1x32x8xbf16> to vector<32x8xbf16>
    %c0_19 = arith.constant 0 : index
    %c0_20 = arith.constant 0 : index
    %c3_21 = arith.constant 3 : index
    %19 = vector.load %arg1[%c0_19, %c0_20, %c3_21] : memref<1x8x136xbf16, #tpu.memory_space<vmem>>, vector<1x8x132xbf16>
    %20 = vector.shape_cast %19 : vector<1x8x132xbf16> to vector<8x132xbf16>
    %cst_22 = arith.constant dense<0.000000e+00> : vector<32x132xf32>
    %21 = tpu.matmul %18, %20, %cst_22 {dimension_numbers = #tpu.dot_dimension_numbers<[1], [0], [0], [1], [0, 0, 1, 1], [], []>} : vector<32x8xbf16>, vector<8x132xbf16>, vector<32x132xf32> -> vector<32x132xf32>
    %22 = arith.addf %16, %21 : vector<32x132xf32>
    %c4 = arith.constant 4 : index
    %c0_23 = arith.constant 0 : index
    %c0_24 = arith.constant 0 : index
    %23 = vector.load %arg2[%c4, %c0_23, %c0_24] : memref<5x32x8xbf16, #tpu.memory_space<vmem>>, vector<1x32x8xbf16>
    %24 = vector.shape_cast %23 : vector<1x32x8xbf16> to vector<32x8xbf16>
    %c0_25 = arith.constant 0 : index
    %c0_26 = arith.constant 0 : index
    %c4_27 = arith.constant 4 : index
    %25 = vector.load %arg1[%c0_25, %c0_26, %c4_27] : memref<1x8x136xbf16, #tpu.memory_space<vmem>>, vector<1x8x132xbf16>
    %26 = vector.shape_cast %25 : vector<1x8x132xbf16> to vector<8x132xbf16>
    %cst_28 = arith.constant dense<0.000000e+00> : vector<32x132xf32>
    %27 = tpu.matmul %24, %26, %cst_28 {dimension_numbers = #tpu.dot_dimension_numbers<[1], [0], [0], [1], [0, 0, 1, 1], [], []>} : vector<32x8xbf16>, vector<8x132xbf16>, vector<32x132xf32> -> vector<32x132xf32>
    %28 = arith.addf %22, %27 : vector<32x132xf32>
    %c0_29 = arith.constant 0 : index
    %c0_30 = arith.constant 0 : index
    %29 = vector.load %arg6[%c0_29, %c0_30] : memref<132x2xf32, #tpu.memory_space<vmem>>, vector<132x2xf32>
    %cst_31 = arith.constant dense<0.000000e+00> : vector<32x2xf32>
    %30 = tpu.matmul %28, %29, %cst_31 {dimension_numbers = #tpu.dot_dimension_numbers<[1], [0], [0], [1], [0, 0, 1, 1], [], []>} : vector<32x132xf32>, vector<132x2xf32>, vector<32x2xf32> -> vector<32x2xf32>
    %31 = arith.mulf %28, %28 : vector<32x132xf32>
    %cst_32 = arith.constant dense<0.000000e+00> : vector<32x2xf32>
    %32 = tpu.matmul %31, %29, %cst_32 {dimension_numbers = #tpu.dot_dimension_numbers<[1], [0], [0], [1], [0, 0, 1, 1], [], []>} : vector<32x132xf32>, vector<132x2xf32>, vector<32x2xf32> -> vector<32x2xf32>
    %c0_33 = arith.constant 0 : index
    %c0_34 = arith.constant 0 : index
    %33 = vector.load %arg3[%c0_33, %c0_34] : memref<32x1xf32, #tpu.memory_space<vmem>>, vector<32x1xf32>
    %cst_35 = arith.constant 6.400000e+01 : f32
    %34 = vector.broadcast %cst_35 : f32 to vector<32x1xf32>
    %35 = arith.mulf %34, %33 : vector<32x1xf32>
    %36 = vector.broadcast %35 : vector<32x1xf32> to vector<32x2xf32>
    %37 = arith.addf %30, %36 : vector<32x2xf32>
    %cst_36 = arith.constant 2.000000e+00 : f32
    %38 = vector.broadcast %cst_36 : f32 to vector<32x1xf32>
    %39 = arith.mulf %38, %33 : vector<32x1xf32>
    %40 = vector.broadcast %39 : vector<32x1xf32> to vector<32x2xf32>
    %41 = arith.mulf %40, %30 : vector<32x2xf32>
    %42 = arith.addf %32, %41 : vector<32x2xf32>
    %43 = arith.mulf %33, %33 : vector<32x1xf32>
    %cst_37 = arith.constant 6.400000e+01 : f32
    %44 = vector.broadcast %cst_37 : f32 to vector<32x1xf32>
    %45 = arith.mulf %44, %43 : vector<32x1xf32>
    %46 = vector.broadcast %45 : vector<32x1xf32> to vector<32x2xf32>
    %47 = arith.addf %42, %46 : vector<32x2xf32>
    %48 = tpu.concatenate %37, %47 in 1 : vector<32x2xf32>, vector<32x2xf32> -> vector<32x4xf32>
    %c0_38 = arith.constant 0 : index
    %c0_39 = arith.constant 0 : index
    %49 = vector.load %arg7[%c0_38, %c0_39] : memref<32x32xf32, #tpu.memory_space<vmem>>, vector<32x32xf32>
    %cst_40 = arith.constant dense<0.000000e+00> : vector<32x4xf32>
    %50 = tpu.matmul %49, %48, %cst_40 {dimension_numbers = #tpu.dot_dimension_numbers<[1], [0], [0], [1], [0, 0, 1, 1], [], []>} : vector<32x32xf32>, vector<32x4xf32>, vector<32x4xf32> -> vector<32x4xf32>
    %51 = vector.extract_strided_slice %50 {offsets = [0, 0], sizes = [32, 2], strides = [1, 1]} : vector<32x4xf32> to vector<32x2xf32>
    %cst_41 = arith.constant 3.906250e-03 : f32
    %52 = vector.broadcast %cst_41 : f32 to vector<32x2xf32>
    %53 = arith.mulf %51, %52 : vector<32x2xf32>
    %54 = vector.extract_strided_slice %50 {offsets = [0, 2], sizes = [32, 2], strides = [1, 1]} : vector<32x4xf32> to vector<32x2xf32>
    %cst_42 = arith.constant 3.906250e-03 : f32
    %55 = vector.broadcast %cst_42 : f32 to vector<32x2xf32>
    %56 = arith.mulf %54, %55 : vector<32x2xf32>
    %57 = arith.mulf %53, %53 : vector<32x2xf32>
    %58 = arith.subf %56, %57 : vector<32x2xf32>
    %cst_43 = arith.constant 9.99999974E-6 : f32
    %59 = vector.broadcast %cst_43 : f32 to vector<32x2xf32>
    %60 = arith.addf %58, %59 : vector<32x2xf32>
    %61 = math.rsqrt %60 : vector<32x2xf32>
    %c0_44 = arith.constant 0 : index
    %c0_45 = arith.constant 0 : index
    %62 = vector.load %arg4[%c0_44, %c0_45] : memref<32x1xf32, #tpu.memory_space<vmem>>, vector<32x1xf32>
    %63 = vector.broadcast %62 : vector<32x1xf32> to vector<32x2xf32>
    %64 = arith.mulf %61, %63 : vector<32x2xf32>
    %c0_46 = arith.constant 0 : index
    %c0_47 = arith.constant 0 : index
    %65 = vector.load %arg5[%c0_46, %c0_47] : memref<32x1xf32, #tpu.memory_space<vmem>>, vector<32x1xf32>
    %66 = vector.broadcast %33 : vector<32x1xf32> to vector<32x2xf32>
    %67 = arith.subf %66, %53 : vector<32x2xf32>
    %68 = arith.mulf %67, %64 : vector<32x2xf32>
    %69 = vector.broadcast %65 : vector<32x1xf32> to vector<32x2xf32>
    %70 = arith.addf %69, %68 : vector<32x2xf32>
    %71 = vector.extract_strided_slice %28 {offsets = [0, 0], sizes = [32, 64], strides = [1, 1]} : vector<32x132xf32> to vector<32x64xf32>
    %72 = vector.extract_strided_slice %64 {offsets = [0, 0], sizes = [32, 1], strides = [1, 1]} : vector<32x2xf32> to vector<32x1xf32>
    %73 = vector.broadcast %72 : vector<32x1xf32> to vector<32x64xf32>
    %74 = arith.mulf %71, %73 : vector<32x64xf32>
    %75 = vector.extract_strided_slice %70 {offsets = [0, 0], sizes = [32, 1], strides = [1, 1]} : vector<32x2xf32> to vector<32x1xf32>
    %76 = vector.broadcast %75 : vector<32x1xf32> to vector<32x64xf32>
    %77 = arith.addf %74, %76 : vector<32x64xf32>
    %cst_48 = arith.constant 5.000000e-01 : f32
    %78 = vector.broadcast %cst_48 : f32 to vector<32x64xf32>
    %79 = arith.mulf %78, %77 : vector<32x64xf32>
    %80 = math.tanh %79 : vector<32x64xf32>
    %cst_49 = arith.constant 1.000000e+00 : f32
    %81 = vector.broadcast %cst_49 : f32 to vector<32x64xf32>
    %82 = arith.addf %80, %81 : vector<32x64xf32>
    %83 = arith.mulf %79, %82 : vector<32x64xf32>
    %c0_50 = arith.constant 0 : index
    %c0_51 = arith.constant 0 : index
    %c0_52 = arith.constant 0 : index
    %84 = vector.load %arg8[%c0_50, %c0_51, %c0_52] : memref<2x32x64xf32, #tpu.memory_space<vmem>>, vector<1x32x64xf32>
    %85 = vector.shape_cast %84 : vector<1x32x64xf32> to vector<32x64xf32>
    %86 = vector.shape_cast %83 : vector<32x64xf32> to vector<1x32x64xf32>
    tpu.vector_store %arg8[%c0_50, %c0_51, %c0_52], %86 {strides = array<i32>} : memref<2x32x64xf32, #tpu.memory_space<vmem>>, vector<1x32x64xf32>,
    %87 = vector.extract_strided_slice %28 {offsets = [0, 68], sizes = [32, 64], strides = [1, 1]} : vector<32x132xf32> to vector<32x64xf32>
    %88 = vector.extract_strided_slice %64 {offsets = [0, 1], sizes = [32, 1], strides = [1, 1]} : vector<32x2xf32> to vector<32x1xf32>
    %89 = vector.broadcast %88 : vector<32x1xf32> to vector<32x64xf32>
    %90 = arith.mulf %87, %89 : vector<32x64xf32>
    %91 = vector.extract_strided_slice %70 {offsets = [0, 1], sizes = [32, 1], strides = [1, 1]} : vector<32x2xf32> to vector<32x1xf32>
    %92 = vector.broadcast %91 : vector<32x1xf32> to vector<32x64xf32>
    %93 = arith.addf %90, %92 : vector<32x64xf32>
    %cst_53 = arith.constant 5.000000e-01 : f32
    %94 = vector.broadcast %cst_53 : f32 to vector<32x64xf32>
    %95 = arith.mulf %94, %93 : vector<32x64xf32>
    %96 = math.tanh %95 : vector<32x64xf32>
    %cst_54 = arith.constant 1.000000e+00 : f32
    %97 = vector.broadcast %cst_54 : f32 to vector<32x64xf32>
    %98 = arith.addf %96, %97 : vector<32x64xf32>
    %99 = arith.mulf %95, %98 : vector<32x64xf32>
    %c1_55 = arith.constant 1 : index
    %c0_56 = arith.constant 0 : index
    %c0_57 = arith.constant 0 : index
    %100 = vector.load %arg8[%c1_55, %c0_56, %c0_57] : memref<2x32x64xf32, #tpu.memory_space<vmem>>, vector<1x32x64xf32>
    %101 = vector.shape_cast %100 : vector<1x32x64xf32> to vector<32x64xf32>
    %102 = vector.shape_cast %99 : vector<32x64xf32> to vector<1x32x64xf32>
    tpu.vector_store %arg8[%c1_55, %c0_56, %c0_57], %102 {strides = array<i32>} : memref<2x32x64xf32, #tpu.memory_space<vmem>>, vector<1x32x64xf32>,
    return
  }
  func.func @transform_0(%arg0: i32) -> (i32, i32, i32) {
    %c0_i32 = arith.constant 0 : i32
    %c0_i32_0 = arith.constant 0 : i32
    %c0_i32_1 = arith.constant 0 : i32
    return %arg0, %c0_i32, %c0_i32_0 : i32, i32, i32
  }
  func.func @transform_1(%arg0: i32) -> (i32, i32, i32) {
    %c0_i32 = arith.constant 0 : i32
    %c0_i32_0 = arith.constant 0 : i32
    %c0_i32_1 = arith.constant 0 : i32
    %c0_i32_2 = arith.constant 0 : i32
    return %c0_i32, %c0_i32_0, %c0_i32_1 : i32, i32, i32
  }
  func.func @transform_2(%arg0: i32) -> (i32, i32) {
    %c0_i32 = arith.constant 0 : i32
    %c0_i32_0 = arith.constant 0 : i32
    %c0_i32_1 = arith.constant 0 : i32
    return %c0_i32, %c0_i32_0 : i32, i32
  }
  func.func @transform_3(%arg0: i32) -> (i32, i32) {
    %c0_i32 = arith.constant 0 : i32
    %c0_i32_0 = arith.constant 0 : i32
    %c0_i32_1 = arith.constant 0 : i32
    return %c0_i32, %c0_i32_0 : i32, i32
  }
  func.func @transform_4(%arg0: i32) -> (i32, i32) {
    %c0_i32 = arith.constant 0 : i32
    %c0_i32_0 = arith.constant 0 : i32
    %c0_i32_1 = arith.constant 0 : i32
    return %c0_i32, %c0_i32_0 : i32, i32
  }
  func.func @transform_5(%arg0: i32) -> (i32, i32) {
    %c0_i32 = arith.constant 0 : i32
    %c0_i32_0 = arith.constant 0 : i32
    %c0_i32_1 = arith.constant 0 : i32
    return %c0_i32, %c0_i32_0 : i32, i32
  }
  func.func @transform_6(%arg0: i32) -> (i32, i32) {
    %c0_i32 = arith.constant 0 : i32
    %c0_i32_0 = arith.constant 0 : i32
    %c0_i32_1 = arith.constant 0 : i32
    return %c0_i32, %c0_i32_0 : i32, i32
  }
  func.func @transform_7(%arg0: i32) -> (i32, i32, i32) {
    %c0_i32 = arith.constant 0 : i32
    %c0_i32_0 = arith.constant 0 : i32
    %c0_i32_1 = arith.constant 0 : i32
    return %arg0, %c0_i32, %c0_i32_0 : i32, i32, i32
  }
}

</mosaic_0001>

<bundles_post_ra>
// kernel: tpu_custom_call.1
= control target key start
LH: loop header
LB: loop body
LE: loop exit
PB: predicated region body
PF: predicated region fallthrough
CT: control target
= control target key end

     0   :  { %12 = vsyncpa [#allocation3], 0  ;;  %s2364_s0 = inlined_call_operand.vmem [shape: bf16[2,8,136], index: 0, kind: input, shape index: {}]   ;;  %s2365_s1 = inlined_call_operand.vmem [shape: bf16[5,32,8], index: 1, kind: input, shape index: {}]   ;;  %s2366_s2 = inlined_call_operand.vmem [shape: f32[32,1], index: 2, kind: input, shape index: {}]   ;;  %s2367_s3 = inlined_call_operand.vmem [shape: f32[32,1], index: 3, kind: input, shape index: {}]   ;;  %s2368_s4 = inlined_call_operand.vmem [shape: f32[32,1], index: 4, kind: input, shape index: {}]   ;;  %s2369_s5 = inlined_call_operand.vmem [shape: f32[132,2], index: 5, kind: input, shape index: {}]   ;;  %s2370_s6 = inlined_call_operand.vmem [shape: f32[32,32], index: 6, kind: input, shape index: {}]   ;;  %s2371_s7 = inlined_call_operand.hbm [shape: f32[4,32,64], index: 7, kind: output, shape index: {}]  }
   0x1   :  { %14 = vsyncpa [#allocation3 + $0x1], 0  ;;  %s1890_s24 = smov 0   ;;  %s1892_s25 = smov 0  }
   0x2   :  { %s1894_s26 = smov 0   ;;  %s1896_s27 = smov 0  }
   0x3 LB: > { %s1911_s28 = sadd.s32 4294967295, %s1834_s27   ;;  %s1568_s29 = sadd.s32 4294967294, %s1834_s27   ;;  %s1834_s27 = sphi %s1896_s27, %s2377_s27   ;;  %s1830_s26 = sphi %s1894_s26, %s2376_s26   ;;  %s1826_s25 = sphi %s1892_s25, %s2375_s25   ;;  %s1822_s24 = sphi %s1890_s24, %s2374_s24  }
   0x4   : > { %s1915_s30 = sadd.s32 1, %s1834_s27   ;;  %s179_s8 = sadd.s32 1, %s1830_s26 }
   0x5   : > { %s176_s9 = ssub.s32 %s1834_s27, %s1915_s30  ;;  %p189_p0 = scmp.ne.s32.totalorder %s1830_s26, %s1826_s25 }
   0x6   : > { %p177_p1 = scmp.eq.s32.totalorder %s176_s9, 0  ;;  %p190_p2 = scmp.eq.s32.totalorder %s1911_s28, 1 }
   0x7   : > { %p195_p3 = scmp.ne.s32.totalorder %s1826_s25, %s1822_s24  ;;  %p196_p4 = scmp.eq.s32.totalorder %s1568_s29, 1 }
   0x8   : > { %s1926_s10 = scalar_select %p177_p1, %s1830_s26, %s179_s8  }
   0x9   : > { %p1928_p5 = por %p190_p2, %p189_p0  ;;  %p1932_p6 = por %p196_p4, %p195_p3 }
   0xa   : > { %p1571_p7 = scmp.ge.s32.totalorder %s1834_s27, 1  ;;  %p240_p8 = scmp.lt.s32.totalorder %s1834_s27, 3 }
   0xc   : > { %p241_p9 = pnand %p1571_p7, %p240_p8 }
   0xd   : > { %p272_p10 = scmp.lt.s32.totalorder (!%p241_p9), %s1911_s28, 1  ;;  %s1837_s18 = smov (!%p241_p9), 127  }
   0xe   : > { %244 = sbr.rel (%p241_p9) target bundleno = 1455 (0x5af), region = 48  ;;  %s1838_s19 = smov (!%p241_p9), 126  }
   0xf   : > { %s1839_s22 = smov (!%p241_p9), 125   ;;  %s1840_s8 = smov (!%p241_p9), 124  }
  0x10   : > { %s1842_s21 = smov (!%p241_p9), 2  }
  0x13   : > { %s273_s13 = scalar_select %p272_p10, %s1911_s28, 1  ;;  %v1836_v0 = vmov 0   ;;  %vm317_vm0 = vcmask 1043456   ;;  %v1733_v5 = vld [vmem:[%s2365_s1] sm:$0xff]   ;;  %vm310_vm1 = vcmask 64512   ;;  %v1735_v6 = vld [vmem:[%s2365_s1 + $0x8] sm:$0xff]  }
  0x14   : > { %356 = vmatprep.mubr.bf16.mxu0 %v1836_v0  ;;  %431 = vmatprep.mubr.bf16.mxu1 %v1836_v0  ;;  %vm308_vm2 = vcmask 1039360   ;;  %vm471_vm3 = vcmask 1031168   ;;  %v1732_v14 = vld [vmem:[%s2365_s1 + $0x10] sm:$0xff]   ;;  %vm565_vm4 = vcmask 1022976   ;;  %v1734_v22 = vld [vmem:[%s2365_s1 + $0x18] sm:$0xff]   ;;  %vm659_vm5 = vcmask 1014784  }
  0x15   : > { %s1642_s14 = sshll.u32 %s273_s13, 3  ;;  %1719 = vset.pattern.permute.xlu0 %v1836_v0  ;;  %1720 = vset.pattern.permute.xlu1 %v1836_v0  ;;  %v1737_v20 = vld [vmem:[%s2365_s1 + $0x30] sm:$0xff]   ;;  %v1739_v24 = vld [vmem:[%s2365_s1 + $0x38] sm:$0xff]   ;;  %v1736_v26 = vld [vmem:[%s2365_s1 + $0x20] sm:$0xff]   ;;  %v1841_v31 = vmov 0.0   ;;  %vm751_vm6 = vcmask 31744  }
  0x16   : > { %s276_s17 = scalar_lea.vmem %s2364_s0, %s1642_s14  ;;  %v1738_v28 = vld [vmem:[%s2365_s1 + $0x28] sm:$0xff]   ;;  %v1740_v29 = vld [vmem:[%s2365_s1 + $0x40] sm:$0xff]   ;;  %v749_v32 = vld [vmem:[%s2369_s5 + $0x78] sm:$0xff]  ;;  %vm1074_vm7 = vcmask 261120   ;;  %vm1065_vm8 = vcmask 15360   ;;  %vm1368_vm9 = vcmask 523264  }
  0x17   : > { %v283_v1 = vld [vmem:[%s276_s17] sm:$0xff]  ;;  %v1741_v30 = vld [vmem:[%s2365_s1 + $0x48] sm:$0xff]   ;;  %v748_v33 = vld [vmem:[%s2369_s5 + $0x70] sm:$0xff]  ;;  %s269_s17 = sand.u32 1, %s1826_s25   ;;  %vm1477_vm10 = vcmask 490496   ;;  %s1847_s13 = smov [#allocation2]  }
  0x18   : > { %v1581_v2 = vcombine.low %v283_v1, %v283_v1  ;;  %v1582_v3 = vcombine.high %v283_v1, %v283_v1  ;;  %v747_v34 = vld [vmem:[%s2369_s5 + $0x68] sm:$0xff]  ;;  %v746_v35 = vld [vmem:[%s2369_s5 + $0x60] sm:$0xff]  ;;  %v745_v36 = vld [vmem:[%s2369_s5 + $0x58] sm:$0xff]  ;;  %s1778_s14 = sshll.u32 %s1847_s13, 4  ;;  %s1779_s14 = int_to_ptr.vmem [resolvable:$false] %s1778_s14 }
  0x19   : > { %v744_v37 = vld [vmem:[%s2369_s5 + $0x50] sm:$0xff]  ;;  %v743_v38 = vld [vmem:[%s2369_s5 + $0x48] sm:$0xff]  ;;  %v742_v39 = vld [vmem:[%s2369_s5 + $0x40] sm:$0xff]  ;;  %s1780_s15 = scalar_lea.vmem %s1779_s14, 2048 }
  0x1a   : > { %304 = vrot.lane.b32.xlu0 %v1581_v2, %s1837_s18  ;;  %467 = vrot.lane.b32.xlu1 %v1581_v2, %s1838_s19  ;;  %v394_v4 = vsel %vm317_vm0, %v1581_v2, 0  ;;  %v741_v40 = vld [vmem:[%s2369_s5 + $0x38] sm:$0xff]  ;;  %v740_v41 = vld [vmem:[%s2369_s5 + $0x30] sm:$0xff] }
  0x1b   : > { %1588 = vmatprep.subr.msk.bf16.mxu1 %vm317_vm0, %v1582_v3  ;;  %v739_v42 = vld [vmem:[%s2369_s5 + $0x28] sm:$0xff]  ;;  %v738_v43 = vld [vmem:[%s2369_s5 + $0x20] sm:$0xff]  ;;  %v737_v44 = vld [vmem:[%s2369_s5 + $0x18] sm:$0xff] }
  0x1c   : > { %414 = vmatpush1.bf16.msra.mxu1 %v394_v4  ;;  %v736_v45 = vld [vmem:[%s2369_s5 + $0x10] sm:$0xff]  ;;  %v735_v46 = vld [vmem:[%s2369_s5 + $0x8] sm:$0xff]  ;;  %v734_v47 = vld [vmem:[%s2369_s5] sm:$0xff] }
  0x1d   : > { %v750_v48 = vld [vmem:[%s2369_s5 + $0x80] sm:$0xf]  ;;  %v2097_v49 = vld [vmem:[%s2366_s2 + $0x18] sm:$0xff]  ;;  %v2102_v50 = vld [vmem:[%s2366_s2 + $0x10] sm:$0xff] }
  0x1e   : > { %306 = vrot.lane.b32.xlu0 %v1582_v3, %s1837_s18  ;;  %469 = vrot.lane.b32.xlu1 %v1582_v3, %s1838_s19  ;;  %v2107_v51 = vld [vmem:[%s2366_s2 + $0x8] sm:$0xff]  ;;  %v895_v52 = vmul.f32 2.0, %v2097_v49  ;;  %v894_v53 = vmul.f32 2.0, %v2102_v50  ;;  %v1020_v54 = vmul.f32 %v2097_v49, %v2097_v49  ;;  %v1019_v57 = vmul.f32 %v2102_v50, %v2102_v50  ;;  %v2119_v58 = vld [vmem:[%s2366_s2] sm:$0xff]  ;;  %s1572_s18 = sshll.u32 %s269_s17, 6 }
  0x1f   : > { %1589 = vmatmul.mubr.msk.bf16.vlgmr.msra.gmra.mxu1 %vm310_vm1, %v1733_v5  ;;  %v893_v56 = vmul.f32 2.0, %v2107_v51  ;;  %v892_v60 = vmul.f32 2.0, %v2119_v58  ;;  %v1017_v61 = vmul.f32 %v2119_v58, %v2119_v58  ;;  %v1018_v62 = vmul.f32 %v2107_v51, %v2107_v51  ;;  %s2291_s20 = scalar_lea.vmem [#allocation2], %s1572_s18 }
  0x20   : > { %441 = vmatprep.mubr.bf16.mxu1 %v1836_v0  ;;  %v1024_v55 = vmul.f32 64.0, %v1020_v54  ;;  %v1023_v59 = vmul.f32 64.0, %v1019_v57  ;;  %v864_v4 = vmul.f32 64.0, %v2119_v58  ;;  %v865_v5 = vmul.f32 64.0, %v2107_v51  ;;  %s1506_s23 = sshll.u32 %s2291_s20, 4  ;;  %s2317_s23 = int_to_ptr.vmem [resolvable:$true] %s1506_s23 }
  0x21   : > { %v1021_v63 = vmul.f32 64.0, %v1017_v61  ;;  %v1022_v1 = vmul.f32 64.0, %v1018_v62  ;;  %s1774_s9 = scalar_lea.vmem %s2317_s23, 1024  ;;  %p1781_p0 = scmp.lt.s32.totalorder %s2317_s23, %s1779_s14 }
  0x22   : > { %563 = vrot.lane.b32.xlu1 %v1582_v3, %s1839_s22  ;;  %561 = vrot.lane.b32.xlu0 %v1581_v2, %s1839_s22  ;;  %s1644_s22 = sshll.u32 %s1911_s28, 10  ;;  %s2324_s28 = scalar_lea.sflag [#allocation3], %s269_s17 }
  0x23   : > { %p1775_p11 = scmp.ne.s32.totalorder %s2317_s23, %s1774_s9  ;;  %p1782_p1 = scmp.lt.s32.totalorder %s1780_s15, %s1774_s9 }
  0x25   : > { %p1776_p12 = pnand %p1775_p11, %p1928_p5  ;;  %p1783_p2 = por %p1782_p1, %p1781_p0 }
  0x26   : > { %657 = vrot.lane.b32.xlu1 %v1582_v3, %s1840_s8  ;;  %655 = vrot.lane.b32.xlu0 %v1581_v2, %s1840_s8  ;;  %v866_v2 = vmul.f32 64.0, %v2102_v50  ;;  %v867_v3 = vmul.f32 64.0, %v2097_v49  ;;  %s2315_s8 = scalar_lea.hbm %s2371_s7, %s1644_s22 }
  0x27   : > { %1590 = vmatmul.mubr.msk.bf16.gmra.mxu1 %vm310_vm1, %v1735_v6  ;;  %p1777_p13 = pneg %p1776_p12 }
  0x28   : > { %611 = vmatprep.mubr.bf16.mxu1 %v1836_v0 }
  0x29   : > { %p1784_p3 = pnand %p1783_p2, %p1777_p13 }
  0x2a   : > { %913 = vperm.xlu0 %1719, %v895_v52   ;;  %908 = vperm.xlu1 %1720, %v894_v53  }
  0x2e   : > { %1042 = vperm.xlu0 %1719, %v1024_v55   ;;  %903 = vperm.xlu1 %1720, %v893_v56  }
  0x32   : > { %1037 = vperm.xlu0 %1719, %v1023_v59   ;;  %898 = vperm.xlu1 %1720, %v892_v60  }
  0x36   : > { %1027 = vperm.xlu0 %1719, %v1021_v63   ;;  %1032 = vperm.xlu1 %1720, %v1022_v1  }
  0x3a   : > { %880 = vperm.xlu0 %1719, %v866_v2   ;;  %885 = vperm.xlu1 %1720, %v867_v3  }
  0x3e   : > { %870 = vperm.xlu0 %1719, %v864_v4   ;;  %875 = vperm.xlu1 %1720, %v865_v5  }
  0x8c   : > { %v305_v7 = vpop.permute.xlu0 %304  ;;  %v468_v8 = vpop.permute.xlu1 %467 }
  0x90   : > { %v307_v9 = vpop.permute.xlu0 %306  ;;  %v470_v10 = vpop.permute.xlu1 %469 }
  0x91   : > { %1583 = vmatprep.subr.msk.bf16.mxu0 %vm317_vm0, %v307_v9  ;;  %v309_v11 = vsel %vm308_vm2, %v305_v7, %v307_v9  ;;  %v472_v12 = vsel %vm471_vm3, %v468_v8, %v470_v10 }
  0x92   : > { %v319_v13 = vsel %vm317_vm0, %v309_v11, 0  ;;  %v480_v15 = vsel %vm317_vm0, %v472_v12, 0 }
  0x93   : > { %339 = vmatpush1.bf16.msra.mxu0 %v319_v13 }
  0x94   : > { %1597 = vmatprep.subr.msk.bf16.mxu0 %vm317_vm0, %v470_v10  ;;  %v564_v16 = vpop.permute.xlu1 %563  ;;  %v562_v17 = vpop.permute.xlu0 %561 }
  0x95   : > { %v566_v18 = vsel %vm565_vm4, %v562_v17, %v564_v16  ;;  %1606 = vmatprep.subr.msk.bf16.mxu1 %vm317_vm0, %v564_v16 }
  0x96   : > { %1584 = vmatmul.mubr.msk.bf16.vlgmr.msra.gmra.mxu0 %vm310_vm1, %v1732_v14  ;;  %v574_v19 = vsel %vm317_vm0, %v566_v18, 0 }
  0x97   : > { %500 = vmatpush1.bf16.msra.mxu0 %v480_v15  ;;  %366 = vmatprep.mubr.bf16.mxu0 %v1836_v0 }
  0x98   : > { %594 = vmatpush1.bf16.msra.mxu1 %v574_v19  ;;  %v658_v21 = vpop.permute.xlu1 %657  ;;  %v656_v23 = vpop.permute.xlu0 %655 }
  0x99   : > { %1615 = vmatprep.subr.msk.bf16.mxu0 %vm317_vm0, %v658_v21  ;;  %v660_v25 = vsel %vm659_vm5, %v656_v23, %v658_v21  ;;  %767 = vmatprep.subr.mxu1 %v1841_v31 }
  0x9a   : > { %v668_v27 = vsel %vm317_vm0, %v660_v25, 0 }
  0x9b   : > { %1607 = vmatmul.mubr.msk.bf16.vlgmr.msra.gmra.mxu1 %vm310_vm1, %v1737_v20 }
  0x9c   : > { %621 = vmatprep.mubr.bf16.mxu1 %v1836_v0  ;;  %768 = vmatpush1.msra.mxu1 %v749_v32 }
  0x9d   : > { %769 = vmatprep.subr.mxu1 %v1841_v31 }
  0x9e   : > { %1585 = vmatmul.mubr.msk.bf16.gmra.mxu0 %vm310_vm1, %v1734_v22  ;;  %770 = vmatpush1.msra.mxu1 %v748_v33 }
  0x9f   : > { %517 = vmatprep.mubr.bf16.mxu0 %v1836_v0  ;;  %771 = vmatprep.subr.mxu1 %v1841_v31 }
  0xa0   : > { %772 = vmatpush1.msra.mxu1 %v747_v34 }
  0xa1   : > { %773 = vmatprep.subr.mxu1 %v1841_v31 }
  0xa2   : > { %774 = vmatpush1.msra.mxu1 %v746_v35 }
  0xa3   : > { %1608 = vmatmul.mubr.msk.bf16.gmra.mxu1 %vm310_vm1, %v1739_v24  ;;  %775 = vmatprep.subr.mxu1 %v1841_v31 }
  0xa4   : > { %776 = vmatpush1.msra.mxu1 %v745_v36 }
  0xa5   : > { %777 = vmatprep.subr.mxu1 %v1841_v31 }
  0xa6   : > { %1598 = vmatmul.mubr.msk.bf16.vlgmr.msra.gmra.mxu0 %vm310_vm1, %v1736_v26  ;;  %778 = vmatpush1.msra.mxu1 %v744_v37 }
  0xa7   : > { %527 = vmatprep.mubr.bf16.mxu0 %v1836_v0  ;;  %688 = vmatpush1.bf16.msra.mxu0 %v668_v27 }
  0xa8   : > { %932 = vmatprep.subr.mxu0 %v1841_v31  ;;  %779 = vmatprep.subr.mxu1 %v1841_v31 }
  0xa9   : > { %780 = vmatpush1.msra.mxu1 %v743_v38 }
  0xaa   : > { %781 = vmatprep.subr.mxu1 %v1841_v31 }
  0xab   : > { %782 = vmatpush1.msra.mxu1 %v742_v39 }
  0xac   : > { %783 = vmatprep.subr.mxu1 %v1841_v31 }
  0xad   : > { %784 = vmatpush1.msra.mxu1 %v741_v40 }
  0xae   : > { %1599 = vmatmul.mubr.msk.bf16.gmra.mxu0 %vm310_vm1, %v1738_v28  ;;  %785 = vmatprep.subr.mxu1 %v1841_v31 }
  0xaf   : > { %705 = vmatprep.mubr.bf16.mxu0 %v1836_v0  ;;  %786 = vmatpush1.msra.mxu1 %v740_v41 }
  0xb0   : > { %787 = vmatprep.subr.mxu1 %v1841_v31 }
  0xb1   : > { %788 = vmatpush1.msra.mxu1 %v739_v42 }
  0xb2   : > { %789 = vmatprep.subr.mxu1 %v1841_v31 }
  0xb3   : > { %790 = vmatpush1.msra.mxu1 %v738_v43 }
  0xb4   : > { %791 = vmatprep.subr.mxu1 %v1841_v31 }
  0xb5   : > { %792 = vmatpush1.msra.mxu1 %v737_v44 }
  0xb6   : > { %1616 = vmatmul.mubr.msk.bf16.vlgmr.msra.gmra.mxu0 %vm310_vm1, %v1740_v29  ;;  %793 = vmatprep.subr.mxu1 %v1841_v31 }
  0xb7   : > { %715 = vmatprep.mubr.bf16.mxu0 %v1836_v0  ;;  %933 = vmatpush1.msra.mxu0 %v749_v32 }
  0xb8   : > { %934 = vmatprep.subr.mxu0 %v1841_v31  ;;  %794 = vmatpush1.msra.mxu1 %v736_v45 }
  0xb9   : > { %935 = vmatpush1.msra.mxu0 %v748_v33  ;;  %795 = vmatprep.subr.mxu1 %v1841_v31 }
  0xba   : > { %936 = vmatprep.subr.mxu0 %v1841_v31  ;;  %796 = vmatpush1.msra.mxu1 %v735_v46 }
  0xbb   : > { %937 = vmatpush1.msra.mxu0 %v747_v34  ;;  %797 = vmatprep.subr.mxu1 %v1841_v31 }
  0xbc   : > { %938 = vmatprep.subr.mxu0 %v1841_v31  ;;  %798 = vmatpush1.msra.mxu1 %v734_v47 }
  0xbd   : > { %939 = vmatpush1.msra.mxu0 %v746_v35  ;;  %829 = vmatprep.subr.mxu1 %v1841_v31 }
  0xbe   : > { %1617 = vmatmul.mubr.msk.bf16.gmra.mxu0 %vm310_vm1, %v1741_v30  ;;  %940 = vmatprep.subr.mxu0 %v1841_v31 }
  0xbf   : > { %941 = vmatpush1.msra.mxu0 %v745_v36  ;;  %1618 = vmatpush2.msk.msra.mxu1 %vm317_vm0, %v750_v48 }
  0xc0   : > { %942 = vmatprep.subr.mxu0 %v1841_v31 }
  0xc1   : > { %943 = vmatpush1.msra.mxu0 %v744_v37 }
  0xc2   : > { %944 = vmatprep.subr.mxu0 %v1841_v31 }
  0xc3   : > { %945 = vmatpush1.msra.mxu0 %v743_v38 }
  0xc4   : > { %946 = vmatprep.subr.mxu0 %v1841_v31 }
  0xc5   : > { %947 = vmatpush1.msra.mxu0 %v742_v39 }
  0xc6   : > { %948 = vmatprep.subr.mxu0 %v1841_v31 }
  0xc7   : > { %949 = vmatpush1.msra.mxu0 %v741_v40 }
  0xc8   : > { %950 = vmatprep.subr.mxu0 %v1841_v31 }
  0xc9   : > { %951 = vmatpush1.msra.mxu0 %v740_v41 }
  0xca   : > { %952 = vmatprep.subr.mxu0 %v1841_v31 }
  0xcb   : > { %953 = vmatpush1.msra.mxu0 %v739_v42 }
  0xcc   : > { %954 = vmatprep.subr.mxu0 %v1841_v31 }
  0xcd   : > { %955 = vmatpush1.msra.mxu0 %v738_v43 }
  0xce   : > { %956 = vmatprep.subr.mxu0 %v1841_v31 }
  0xcf   : > { %957 = vmatpush1.msra.mxu0 %v737_v44 }
  0xd0   : > { %958 = vmatprep.subr.mxu0 %v1841_v31 }
  0xd1   : > { %959 = vmatpush1.msra.mxu0 %v736_v45 }
  0xd2   : > { %960 = vmatprep.subr.mxu0 %v1841_v31 }
  0xd3   : > { %961 = vmatpush1.msra.mxu0 %v735_v46 }
  0xd4   : > { %962 = vmatprep.subr.mxu0 %v1841_v31 }
  0xd5   : > { %963 = vmatpush1.msra.mxu0 %v734_v47 }
  0xd6   : > { %994 = vmatprep.subr.mxu0 %v1841_v31 }
  0xd7   : > { %1623 = vmatpush2.msk.msra.mxu0 %vm317_vm0, %v750_v48 }
  0xdf   : > { %v433_v6 = vpop.f32.mrf.mxu1 }
  0xe1   : > { %v435_v7 = vpop.f32.mrf.mxu1 }
  0xe3   : > { %v437_v8 = vpop.f32.mrf.mxu1 }
  0xe5   : > { %v439_v9 = vpop.f32.mrf.mxu1 }
  0xe7   : > { %v443_v11 = vpop.f32.mrf.mxu1 }
  0xe9   : > { %v445_v14 = vpop.f32.mrf.mxu1 }
  0xeb   : > { %v447_v17 = vpop.f32.mrf.mxu1 }
  0xed   : > { %v449_v20 = vpop.f32.mrf.mxu1 }
 0x156   : > { %v358_v10 = vpop.f32.mrf.mxu0 }
 0x157   : > { %v434_v30 = vadd.f32 %v433_v6, %v358_v10 }
 0x158   : > { %v360_v12 = vpop.f32.mrf.mxu0 }
 0x159   : > { %v436_v33 = vadd.f32 %v435_v7, %v360_v12 }
 0x15a   : > { %v362_v13 = vpop.f32.mrf.mxu0 }
 0x15b   : > { %v613_v22 = vpop.f32.mrf.mxu1  ;;  %v438_v37 = vadd.f32 %v437_v8, %v362_v13 }
 0x15c   : > { %v364_v15 = vpop.f32.mrf.mxu0 }
 0x15d   : > { %v615_v25 = vpop.f32.mrf.mxu1  ;;  %v440_v40 = vadd.f32 %v439_v9, %v364_v15 }
 0x15e   : > { %v368_v16 = vpop.f32.mrf.mxu0 }
 0x15f   : > { %v617_v28 = vpop.f32.mrf.mxu1  ;;  %v444_v46 = vadd.f32 %v443_v11, %v368_v16 }
 0x160   : > { %v370_v18 = vpop.f32.mrf.mxu0 }
 0x161   : > { %v619_v31 = vpop.f32.mrf.mxu1  ;;  %v446_v53 = vadd.f32 %v445_v14, %v370_v18 }
 0x162   : > { %v372_v19 = vpop.f32.mrf.mxu0 }
 0x163   : > { %v623_v38 = vpop.f32.mrf.mxu1  ;;  %v448_v62 = vadd.f32 %v447_v17, %v372_v19 }
 0x164   : > { %v374_v21 = vpop.f32.mrf.mxu0 }
 0x165   : > { %v625_v47 = vpop.f32.mrf.mxu1  ;;  %v450_v4 = vadd.f32 %v449_v20, %v374_v21 }
 0x166   : > { %v519_v23 = vpop.f32.mrf.mxu0 }
 0x167   : > { %v538_v34 = vadd.f32 %v519_v23, %v434_v30  ;;  %v627_v63 = vpop.f32.mrf.mxu1 }
 0x168   : > { %v521_v24 = vpop.f32.mrf.mxu0 }
 0x169   : > { %v539_v36 = vadd.f32 %v521_v24, %v436_v33  ;;  %v632_v41 = vadd.f32 %v613_v22, %v538_v34  ;;  %v629_v12 = vpop.f32.mrf.mxu1 }
 0x16a   : > { %v523_v26 = vpop.f32.mrf.mxu0 }
 0x16b   : > { %v540_v42 = vadd.f32 %v523_v26, %v438_v37  ;;  %v633_v44 = vadd.f32 %v615_v25, %v539_v36 }
 0x16c   : > { %v525_v27 = vpop.f32.mrf.mxu0 }
 0x16d   : > { %v541_v45 = vadd.f32 %v525_v27, %v440_v40  ;;  %v634_v55 = vadd.f32 %v617_v28, %v540_v42  ;;  %v909_v27 = vpop.permute.xlu1 %908  ;;  %v914_v28 = vpop.permute.xlu0 %913 }
 0x16e   : > { %v529_v29 = vpop.f32.mrf.mxu0 }
 0x16f   : > { %v542_v56 = vadd.f32 %v529_v29, %v444_v46  ;;  %v635_v59 = vadd.f32 %v619_v31, %v541_v45 }
 0x170   : > { %v531_v32 = vpop.f32.mrf.mxu0 }
 0x171   : > { %v543_v60 = vadd.f32 %v531_v32, %v446_v53  ;;  %v636_v6 = vadd.f32 %v623_v38, %v542_v56  ;;  %v904_v30 = vpop.permute.xlu1 %903  ;;  %v1043_v33 = vpop.permute.xlu0 %1042 }
 0x172   : > { %v533_v35 = vpop.f32.mrf.mxu0 }
 0x173   : > { %v544_v7 = vadd.f32 %v533_v35, %v448_v62  ;;  %v637_v9 = vadd.f32 %v625_v47, %v543_v60 }
 0x174   : > { %v535_v39 = vpop.f32.mrf.mxu0 }
 0x175   : > { %v545_v10 = vadd.f32 %v535_v39, %v450_v4  ;;  %v638_v17 = vadd.f32 %v627_v63, %v544_v7  ;;  %v899_v38 = vpop.permute.xlu1 %898  ;;  %v1038_v42 = vpop.permute.xlu0 %1037 }
 0x176   : > { %v707_v43 = vpop.f32.mrf.mxu0 }
 0x177   : > { %v2130_v48 = vadd.f32 %v707_v43, %v632_v41  ;;  %v639_v19 = vadd.f32 %v629_v12, %v545_v10 }
 0x178   : > { %v709_v52 = vpop.f32.mrf.mxu0 }
 0x179   : > { %v2132_v54 = vadd.f32 %v709_v52, %v633_v44  ;;  %v852_v1 = vmul.f32 %v2130_v48, %v2130_v48  ;;  %v1028_v63 = vpop.permute.xlu0 %1027  ;;  %v1033_v7 = vpop.permute.xlu1 %1032 }
 0x17a   : > { %v711_v57 = vpop.f32.mrf.mxu0 }
 0x17b   : > { %v853_v61 = vmul.f32 %v2132_v54, %v2132_v54  ;;  %1619 = vmatprep.mubr.msk.f32.mxu1 %vm751_vm6, %v2132_v54  ;;  %v2140_v2 = vadd.f32 %v711_v57, %v634_v55 }
 0x17c   : > { %v713_v3 = vpop.f32.mrf.mxu0  ;;  %832 = vmatmul.mubr.f32.vlgmr.msra.gmra.mxu1 %v2130_v48 }
 0x17d   : > { %v2143_v5 = vadd.f32 %v713_v3, %v635_v59  ;;  %1624 = vmatprep.mubr.msk.f32.mxu0 %vm751_vm6, %v853_v61  ;;  %v854_v15 = vmul.f32 %v2140_v2, %v2140_v2  ;;  %v1070_v59 = vld [vmem:[%s2370_s6] sm:$0xff]  ;;  %v886_v10 = vpop.permute.xlu1 %885 }
 0x17e   : > { %v717_v8 = vpop.f32.mrf.mxu0  ;;  %997 = vmatmul.mubr.f32.vlgmr.msra.gmra.mxu0 %v852_v1 }
 0x17f   : > { %v855_v11 = vmul.f32 %v2143_v5, %v2143_v5  ;;  %1620 = vmatprep.mubr.msk.f32.mxu1 %vm751_vm6, %v2143_v5  ;;  %v2150_v13 = vadd.f32 %v717_v8, %v636_v6 }
 0x180   : > { %v719_v14 = vpop.f32.mrf.mxu0  ;;  %837 = vmatmul.mubr.f32.gmra.mxu1 %v2140_v2 }
 0x181   : > { %v2155_v16 = vadd.f32 %v719_v14, %v637_v9  ;;  %1625 = vmatprep.mubr.msk.f32.mxu0 %vm751_vm6, %v855_v11  ;;  %v856_v23 = vmul.f32 %v2150_v13, %v2150_v13  ;;  %v881_v9 = vpop.permute.xlu0 %880  ;;  %v876_v12 = vpop.permute.xlu1 %875 }
 0x182   : > { %v721_v18 = vpop.f32.mrf.mxu0  ;;  %1002 = vmatmul.mubr.f32.gmra.mxu0 %v854_v15 }
 0x183   : > { %v857_v20 = vmul.f32 %v2155_v16, %v2155_v16  ;;  %1621 = vmatprep.mubr.msk.f32.mxu1 %vm751_vm6, %v2155_v16  ;;  %v2162_v21 = vadd.f32 %v721_v18, %v638_v17 }
 0x184   : > { %v723_v22 = vpop.f32.mrf.mxu0  ;;  %842 = vmatmul.mubr.f32.gmra.mxu1 %v2150_v13 }
 0x185   : > { %v2167_v24 = vadd.f32 %v723_v22, %v639_v19  ;;  %1626 = vmatprep.mubr.msk.f32.mxu0 %vm751_vm6, %v857_v20  ;;  %v858_v26 = vmul.f32 %v2162_v21, %v2162_v21  ;;  %v871_v11 = vpop.permute.xlu0 %870 }
 0x186   : > { %1007 = vmatmul.mubr.f32.gmra.mxu0 %v856_v23 }
 0x187   : > { %v859_v25 = vmul.f32 %v2167_v24, %v2167_v24  ;;  %1622 = vmatprep.mubr.msk.f32.mxu1 %vm751_vm6, %v2167_v24 }
 0x188   : > { %847 = vmatmul.mubr.f32.gmra.mxu1 %v2162_v21 }
 0x189   : > { %1627 = vmatprep.mubr.msk.f32.mxu0 %vm751_vm6, %v859_v25  ;;  %1661 = vmatprep.mubr.msk.f32.mxu1 %vm1074_vm7, %v1070_v59 }
 0x18a   : > { %1012 = vmatmul.mubr.f32.gmra.mxu0 %v858_v26 }
 0x23c   : > { %v833_v29 = vpop.f32.mrf.mxu1 }
 0x23d   : > { %v916_v39 = vmul.f32 %v899_v38, %v833_v29  ;;  %v888_v26 = vadd.f32 %v871_v11, %v833_v29  ;;  %v1073_v29 = vld [vmem:[%s2370_s6 + $0x18] sm:$0xff] }
 0x23e   : > { %v835_v31 = vpop.f32.mrf.mxu1  ;;  %v998_v32 = vpop.f32.mrf.mxu0 }
 0x23f   : > { %v999_v47 = vadd.f32 %v998_v32, %v916_v39  ;;  %v1072_v31 = vld [vmem:[%s2370_s6 + $0x10] sm:$0xff] }
 0x240   : > { %v838_v34 = vpop.f32.mrf.mxu1  ;;  %v1000_v35 = vpop.f32.mrf.mxu0 }
 0x241   : > { %v917_v55 = vmul.f32 %v904_v30, %v838_v34  ;;  %v1045_v3 = vadd.f32 %v1028_v63, %v999_v47  ;;  %v889_v20 = vadd.f32 %v876_v12, %v838_v34  ;;  %v1071_v30 = vld [vmem:[%s2370_s6 + $0x8] sm:$0xff]  ;;  %v1210_v47 = vld [vmem:[%s2367_s3 + $0x10] sm:$0xff] }
 0x242   : > { %v840_v36 = vpop.f32.mrf.mxu1  ;;  %v1003_v37 = vpop.f32.mrf.mxu0 }
 0x243   : > { %v1004_v4 = vadd.f32 %v1003_v37, %v917_v55  ;;  %v1239_v55 = vld [vmem:[%s2368_s4 + $0x18] sm:$0xff] }
 0x244   : > { %v843_v40 = vpop.f32.mrf.mxu1  ;;  %v1005_v41 = vpop.f32.mrf.mxu0 }
 0x245   : > { %v918_v43 = vmul.f32 %v909_v27, %v843_v40  ;;  %v1046_v8 = vadd.f32 %v1033_v7, %v1004_v4  ;;  %v890_v18 = vadd.f32 %v881_v9, %v843_v40 }
 0x246   : > { %v845_v44 = vpop.f32.mrf.mxu1  ;;  %v1008_v45 = vpop.f32.mrf.mxu0 }
 0x247   : > { %v1009_v46 = vadd.f32 %v1008_v45, %v918_v43  ;;  %v1209_v44 = vld [vmem:[%s2367_s3 + $0x8] sm:$0xff]  ;;  %v1208_v45 = vld [vmem:[%s2367_s3] sm:$0xff] }
 0x248   : > { %v848_v52 = vpop.f32.mrf.mxu1  ;;  %v1010_v53 = vpop.f32.mrf.mxu0 }
 0x249   : > { %v1047_v56 = vadd.f32 %v1038_v42, %v1009_v46  ;;  %v919_v57 = vmul.f32 %v914_v28, %v848_v52  ;;  %v891_v15 = vadd.f32 %v886_v10, %v848_v52  ;;  %v1211_v46 = vld [vmem:[%s2367_s3 + $0x18] sm:$0xff]  ;;  %v1237_v52 = vld [vmem:[%s2368_s4 + $0x8] sm:$0xff]  ;;  %v1236_v53 = vld [vmem:[%s2368_s4] sm:$0xff] }
 0x24a   : > { %v850_v60 = vpop.f32.mrf.mxu1  ;;  %v1013_v61 = vpop.f32.mrf.mxu0 }
 0x24b   : > { %v1014_v62 = vadd.f32 %v1013_v61, %v919_v57  ;;  %1057 = vrot.lane.b32.xlu0 %v1047_v56, %s1842_s21 }
 0x24c   : > { %v1015_v1 = vpop.f32.mrf.mxu0 }
 0x24d   : > { %v1048_v6 = vadd.f32 %v1043_v33, %v1014_v62 }
 0x24f   : > { %1053 = vrot.lane.b32.xlu0 %v1045_v3, %s1842_s21  ;;  %1059 = vrot.lane.b32.xlu1 %v1048_v6, %s1842_s21 }
 0x253   : > { %1055 = vrot.lane.b32.xlu1 %v1046_v8, %s1842_s21 }
 0x2bd   : > { %v1058_v14 = vpop.permute.xlu0 %1057 }
 0x2be   : > { %v1068_v22 = vsel %vm1065_vm8, %v890_v18, %v1058_v14 }
 0x2c1   : > { %v1060_v17 = vpop.permute.xlu1 %1059  ;;  %v1054_v23 = vpop.permute.xlu0 %1053 }
 0x2c2   : > { %v1069_v19 = vsel %vm1065_vm8, %v891_v15, %v1060_v17  ;;  %v1066_v28 = vsel %vm1065_vm8, %v888_v26, %v1054_v23 }
 0x2c3   : > { %1653 = vmatprep.subr.mxu1 %v1069_v19 }
 0x2c4   : > { %1654 = vmatpush3.msra.mxu1 %v1069_v19 }
 0x2c5   : > { %v1056_v25 = vpop.permute.xlu1 %1055  ;;  %1655 = vmatprep.subr.mxu1 %v1068_v22 }
 0x2c6   : > { %1656 = vmatpush3.msra.mxu1 %v1068_v22  ;;  %v1067_v27 = vsel %vm1065_vm8, %v889_v20, %v1056_v25  ;;  %v1844_v20 = vmov 1  }
 0x2c7   : > { %1657 = vmatprep.subr.mxu1 %v1067_v27 }
 0x2c8   : > { %1658 = vmatpush3.msra.mxu1 %v1067_v27 }
 0x2c9   : > { %1659 = vmatprep.subr.mxu1 %v1066_v28 }
 0x2ca   : > { %1660 = vmatpush3.msra.mxu1 %v1066_v28 }
 0x2cb   : > { %1662 = vmatmul.mubr.msk.f32.vlgmr.msra.gmra.mxu1 %vm1074_vm7, %v1071_v30 }
 0x2cc   : > { %1664 = vmatprep.mubr.msk.f32.mxu1 %vm1074_vm7, %v1072_v31 }
 0x2cf   : > { %1665 = vmatmul.mubr.msk.f32.gmra.mxu1 %vm1074_vm7, %v1073_v29 }
 0x38b   : > { %v1663_v32 = vpop.f32.mrf.mxu1 }
 0x38c   : > { %v2198_v33 = vmul.f32 0.00390625, %v1663_v32 }
 0x38d   : > { %v1153_v34 = vpop.f32.mrf.mxu1 }
 0x38e   : > { %v2200_v35 = vmul.f32 0.00390625, %v1153_v34  ;;  %v1177_v36 = vmul.f32 %v2198_v33, %v2198_v33 }
 0x38f   : > { %v1666_v37 = vpop.f32.mrf.mxu1 }
 0x390   : > { %v2204_v38 = vmul.f32 0.00390625, %v1666_v37  ;;  %1186 = vrot.lane.b32.xlu0 %v1177_v36, %s1842_s21  ;;  %v1176_v39 = vmul.f32 %v2200_v35, %v2200_v35 }
 0x391   : > { %v1163_v40 = vpop.f32.mrf.mxu1 }
 0x392   : > { %v2209_v41 = vmul.f32 0.00390625, %v1163_v40  ;;  %1184 = vrot.lane.b32.xlu1 %v1176_v39, %s1842_s21  ;;  %v1179_v42 = vmul.f32 %v2204_v38, %v2204_v38 }
 0x394   : > { %1190 = vrot.lane.b32.xlu0 %v1179_v42, %s1842_s21  ;;  %v1178_v43 = vmul.f32 %v2209_v41, %v2209_v41 }
 0x396   : > { %1188 = vrot.lane.b32.xlu1 %v1178_v43, %s1842_s21 }
 0x398   : > { %1219 = vperm.xlu0 %1719, %v1209_v44  }
 0x39a   : > { %1214 = vperm.xlu1 %1720, %v1208_v45  }
 0x39c   : > { %1229 = vperm.xlu0 %1719, %v1211_v46  }
 0x39e   : > { %1224 = vperm.xlu1 %1720, %v1210_v47  }
 0x3a0   : > { %1247 = vperm.xlu0 %1719, %v2107_v51   ;;  %v1843_v51 = vmov 3  }
 0x3a2   : > { %1242 = vperm.xlu1 %1720, %v2119_v58  }
 0x3a4   : > { %1257 = vperm.xlu0 %1719, %v2097_v49   ;;  %v1238_v49 = vld [vmem:[%s2368_s4 + $0x10] sm:$0xff] }
 0x3a6   : > { %1252 = vperm.xlu1 %1720, %v2102_v50  }
 0x3a8   : > { %1291 = vperm.xlu0 %1719, %v1237_v52  }
 0x3aa   : > { %1286 = vperm.xlu1 %1720, %v1236_v53  }
 0x3ac   : > { %1301 = vperm.xlu0 %1719, %v1239_v55  }
 0x3ae   : > { %1296 = vperm.xlu1 %1720, %v1238_v49  }
 0x3b0   : > { %1722 = vset.pattern.permute.xlu0 %v1843_v51 }
 0x3b2   : > { %1721 = vset.pattern.permute.xlu1 %v1843_v51 }
 0x402   : > { %v1187_v50 = vpop.permute.xlu0 %1186 }
 0x403   : > { %v1197_v58 = vsub.f32 %v2198_v33, %v1187_v50 }
 0x404   : > { %v1185_v56 = vpop.permute.xlu1 %1184 }
 0x405   : > { %v1201_v57 = vadd.f32 1e-05, %v1197_v58  ;;  %v1196_v59 = vsub.f32 %v2200_v35, %v1185_v56 }
 0x406   : > { %v1191_v60 = vpop.permute.xlu0 %1190 }
 0x407   : > { %1742 = vrsqrt.f32 %v1201_v57  ;;  %v1200_v61 = vadd.f32 1e-05, %v1196_v59  ;;  %v1199_v62 = vsub.f32 %v2204_v38, %v1191_v60 }
 0x408   : > { %v1189_v63 = vpop.permute.xlu1 %1188 }
 0x409   : > { %1744 = vrsqrt.f32 %v1200_v61  ;;  %v1203_v1 = vadd.f32 1e-05, %v1199_v62  ;;  %v1198_v3 = vsub.f32 %v2209_v41, %v1189_v63 }
 0x40b   : > { %1746 = vrsqrt.f32 %v1203_v1  ;;  %v1202_v4 = vadd.f32 1e-05, %v1198_v3 }
 0x40d   : > { %1748 = vrsqrt.f32 %v1202_v4 }
 0x413   : > { %v1220_v6 = vpop.permute.xlu0 %1219 }
 0x414   : > { %v1743_v7 = vpop.eup %1742 }
 0x415   : > { %v1233_v8 = vmul.f32 %v1743_v7, %v1220_v6  ;;  %v1215_v9 = vpop.permute.xlu1 %1214 }
 0x416   : > { %v1745_v10 = vpop.eup %1744 }
 0x417   : > { %v1232_v11 = vmul.f32 %v1745_v10, %v1215_v9  ;;  %1270 = vrot.lane.b32.xlu0 %v1233_v8, %s1838_s19  ;;  %v1230_v12 = vpop.permute.xlu0 %1229 }
 0x418   : > { %v1747_v14 = vpop.eup %1746 }
 0x419   : > { %v1235_v15 = vmul.f32 %v1747_v14, %v1230_v12  ;;  %1268 = vrot.lane.b32.xlu1 %v1232_v11, %s1838_s19  ;;  %v1225_v17 = vpop.permute.xlu1 %1224 }
 0x41a   : > { %v1749_v18 = vpop.eup %1748 }
 0x41b   : > { %v1234_v19 = vmul.f32 %v1749_v18, %v1225_v17  ;;  %1274 = vrot.lane.b32.xlu0 %v1235_v15, %s1838_s19  ;;  %v1248_v22 = vpop.permute.xlu0 %1247 }
 0x41c   : > { %v1261_v29 = vsub.f32 %v1248_v22, %v2198_v33 }
 0x41d   : > { %1272 = vrot.lane.b32.xlu1 %v1234_v19, %s1838_s19  ;;  %v1243_v23 = vpop.permute.xlu1 %1242  ;;  %s1846_s19 = smov 60  }
 0x41e   : > { %v1260_v34 = vsub.f32 %v1243_v23, %v2200_v35  ;;  %v1845_v35 = vmov 2  }
 0x41f   : > { %1378 = vperm.xlu0 %1722, %v1233_v8   ;;  %v1258_v25 = vpop.permute.xlu0 %1257 }
 0x420   : > { %v1263_v39 = vsub.f32 %v1258_v25, %v2204_v38 }
 0x421   : > { %1374 = vperm.xlu1 %1721, %v1232_v11   ;;  %v1253_v26 = vpop.permute.xlu1 %1252 }
 0x422   : > { %v1262_v44 = vsub.f32 %v1253_v26, %v2209_v41 }
 0x423   : > { %1724 = vset.pattern.permute.xlu0 %v1844_v20  ;;  %v1292_v27 = vpop.permute.xlu0 %1291 }
 0x425   : > { %1386 = vperm.xlu1 %1721, %v1235_v15   ;;  %v1287_v28 = vpop.permute.xlu1 %1286 }
 0x427   : > { %v1302_v30 = vpop.permute.xlu0 %1301 }
 0x429   : > { %1382 = vperm.xlu1 %1721, %v1234_v19   ;;  %v1297_v31 = vpop.permute.xlu1 %1296 }
 0x42d   : > { %1723 = vset.pattern.permute.xlu1 %v1844_v20 }
 0x489   : > { %v1271_v32 = vpop.permute.xlu0 %1270 }
 0x48a   : > { %v1281_v36 = vmul.f32 %v1271_v32, %v1261_v29 }
 0x48b   : > { %v1269_v37 = vpop.permute.xlu1 %1268 }
 0x48c   : > { %v1305_v40 = vadd.f32 %v1292_v27, %v1281_v36  ;;  %v1280_v42 = vmul.f32 %v1269_v37, %v1260_v34 }
 0x48d   : > { %v1275_v43 = vpop.permute.xlu0 %1274 }
 0x48e   : > { %v1304_v45 = vadd.f32 %v1287_v28, %v1280_v42  ;;  %v1283_v46 = vmul.f32 %v1275_v43, %v1263_v39  ;;  %1402 = vperm.xlu1 %1723, %v1305_v40  }
 0x48f   : > { %v1273_v47 = vpop.permute.xlu1 %1272 }
 0x490   : > { %v1282_v52 = vmul.f32 %v1273_v47, %v1262_v44  ;;  %1398 = vperm.xlu0 %1724, %v1304_v45   ;;  %v1307_v53 = vadd.f32 %v1302_v30, %v1283_v46 }
 0x492   : > { %v1306_v33 = vadd.f32 %v1297_v31, %v1282_v52 }
 0x494   : > { %1410 = vperm.xlu0 %1724, %v1307_v53   ;;  %1406 = vperm.xlu1 %1723, %v1306_v33  }
 0x498   : > { %1726 = vset.pattern.permute.xlu0 %v1845_v35  ;;  %1725 = vset.pattern.permute.xlu1 %v1845_v35 }
 0x499   : > { %1313 = vperm.xlu0 %1726, %v1233_v8   ;;  %1309 = vperm.xlu1 %1725, %v1232_v11  }
 0x49a   : > { %v1379_v55 = vpop.permute.xlu0 %1378 }
 0x49b   : > { %v1391_v51 = vmul.f32 %v1379_v55, %v2140_v2  ;;  %v1392_v50 = vmul.f32 %v1379_v55, %v2143_v5 }
 0x49c   : > { %v1375_v38 = vpop.permute.xlu1 %1374 }
 0x49d   : > { %1727 = vset.pattern.permute.xlu0 %v1836_v0  ;;  %1317 = vperm.xlu1 %1725, %v1234_v19   ;;  %v1389_v56 = vmul.f32 %v1375_v38, %v2130_v48  ;;  %v1390_v57 = vmul.f32 %v1375_v38, %v2132_v54 }
 0x49e   : > { %1330 = vperm.xlu0 %1727, %v1304_v45  }
 0x4a0   : > { %v1387_v41 = vpop.permute.xlu1 %1386 }
 0x4a1   : > { %1321 = vperm.xlu1 %1725, %v1235_v15   ;;  %v1395_v3 = vmul.f32 %v1387_v41, %v2162_v21  ;;  %v1396_v4 = vmul.f32 %v1387_v41, %v2167_v24 }
 0x4a2   : > { %1345 = vperm.xlu0 %1727, %v1307_v53  }
 0x4a4   : > { %v1383_v49 = vpop.permute.xlu1 %1382 }
 0x4a5   : > { %1728 = vset.pattern.permute.xlu1 %v1836_v0  ;;  %v1393_v6 = vmul.f32 %v1383_v49, %v2150_v13  ;;  %v1394_v8 = vmul.f32 %v1383_v49, %v2155_v16 }
 0x4a6   : > { %1335 = vperm.xlu1 %1728, %v1305_v40   ;;  %1729 = vset.pattern.permute.xlu0 %v1844_v20 }
 0x4aa   : > { %1340 = vperm.xlu1 %1728, %v1306_v33  }
 0x509   : > { %v1403_v58 = vpop.permute.xlu1 %1402 }
 0x50a   : > { %v1415_v59 = vadd.f32 %v1403_v58, %v1391_v51  ;;  %v1416_v60 = vadd.f32 %v1403_v58, %v1392_v50 }
 0x50b   : > { %v1399_v61 = vpop.permute.xlu0 %1398 }
 0x50c   : > { %v1423_v0 = vmul.f32 0.5, %v1415_v59  ;;  %v1424_v62 = vmul.f32 0.5, %v1416_v60  ;;  %v1413_v63 = vadd.f32 %v1399_v61, %v1389_v56  ;;  %v1414_v1 = vadd.f32 %v1399_v61, %v1390_v57 }
 0x50e   : > { %1750 = vtanh.f32 %v1423_v0  ;;  %v1421_v5 = vmul.f32 0.5, %v1413_v63  ;;  %v1422_v7 = vmul.f32 0.5, %v1414_v1 }
 0x50f   : > { %1752 = vtanh.f32 %v1424_v62  ;;  %v1411_v54 = vpop.permute.xlu0 %1410  ;;  %v1407_v9 = vpop.permute.xlu1 %1406 }
 0x510   : > { %1754 = vtanh.f32 %v1421_v5  ;;  %v1419_v10 = vadd.f32 %v1411_v54, %v1395_v3  ;;  %v1420_v11 = vadd.f32 %v1411_v54, %v1396_v4  ;;  %v1417_v12 = vadd.f32 %v1407_v9, %v1393_v6 }
 0x511   : > { %1756 = vtanh.f32 %v1422_v7  ;;  %v1418_v14 = vadd.f32 %v1407_v9, %v1394_v8 }
 0x512   : > { %v2268_v15 = vmul.f32 0.5, %v1419_v10  ;;  %v2270_v17 = vmul.f32 0.5, %v1420_v11  ;;  %v1425_v24 = vmul.f32 0.5, %v1417_v12 }
 0x513   : > { %v1426_v18 = vmul.f32 0.5, %v1418_v14 }
 0x514   : > { %1758 = vtanh.f32 %v2268_v15  ;;  %v1314_v19 = vpop.permute.xlu0 %1313  ;;  %v1310_v20 = vpop.permute.xlu1 %1309 }
 0x515   : > { %1760 = vtanh.f32 %v2270_v17  ;;  %v1324_v16 = vmul.f32 %v1310_v20, %v2130_v48  ;;  %v1325_v44 = vmul.f32 %v1314_v19, %v2140_v2 }
 0x516   : > { %1762 = vtanh.f32 %v1425_v24 }
 0x517   : > { %1764 = vtanh.f32 %v1426_v18 }
 0x518   : > { %v1318_v22 = vpop.permute.xlu1 %1317 }
 0x519   : > { %v1331_v23 = vpop.permute.xlu0 %1330  ;;  %v1326_v41 = vmul.f32 %v1318_v22, %v2150_v13 }
 0x51a   : > { %v1348_v25 = vadd.f32 %v1331_v23, %v1324_v16 }
 0x51b   : > { %v1751_v26 = vpop.eup %1750 }
 0x51c   : > { %v1753_v27 = vpop.eup %1752  ;;  %v1352_v28 = vmul.f32 0.5, %v1348_v25  ;;  %v1322_v30 = vpop.permute.xlu1 %1321  ;;  %v1439_v31 = vadd.f32 1.0, %v1751_v26 }
 0x51d   : > { %v1755_v29 = vpop.eup %1754  ;;  %v1327_v32 = vmul.f32 %v1322_v30, %v2162_v21  ;;  %v1346_v34 = vpop.permute.xlu0 %1345  ;;  %v1440_v36 = vadd.f32 1.0, %v1753_v27 }
 0x51e   : > { %v1757_v37 = vpop.eup %1756  ;;  %1766 = vtanh.f32 %v1352_v28  ;;  %v1447_v39 = vmul.f32 %v1439_v31, %v1423_v0  ;;  %v1437_v40 = vadd.f32 1.0, %v1755_v29 }
 0x51f   : > { %v1351_v42 = vadd.f32 %v1346_v34, %v1327_v32  ;;  %v1448_v43 = vmul.f32 %v1440_v36, %v1424_v62  ;;  %v1438_v48 = vadd.f32 1.0, %v1757_v37 }
 0x520   : > { %1465 = vrot.lane.b32.xlu1 %v1447_v39, %s1846_s19  ;;  %v1445_v53 = vmul.f32 %v1437_v40, %v1421_v5 }
 0x521   : > { %v1759_v45 = vpop.eup %1758  ;;  %v1355_v46 = vmul.f32 0.5, %v1351_v42  ;;  %1467 = vrot.lane.b32.xlu0 %v1448_v43, %s1846_s19  ;;  %v1336_v47 = vpop.permute.xlu1 %1335  ;;  %v1446_v35 = vmul.f32 %v1438_v48, %v1422_v7 }
 0x522   : > { %v1761_v21 = vpop.eup %1760  ;;  %v1349_v52 = vadd.f32 %v1336_v47, %v1325_v44  ;;  %v1443_v56 = vadd.f32 1.0, %v1759_v45 }
 0x523   : > { %v1763_v33 = vpop.eup %1762  ;;  %1768 = vtanh.f32 %v1355_v46  ;;  %v1444_v59 = vadd.f32 1.0, %v1761_v21 }
 0x524   : > { %v1765_v38 = vpop.eup %1764  ;;  %v1353_v55 = vmul.f32 0.5, %v1349_v52  ;;  %1461 = vrot.lane.b32.xlu1 %v1445_v53, %s1846_s19  ;;  %v1441_v2 = vadd.f32 1.0, %v1763_v33  ;;  %v1451_v13 = vmul.f32 %v1443_v56, %v2268_v15 }
 0x525   : > { %1463 = vrot.lane.b32.xlu0 %v1446_v35, %s1846_s19  ;;  %v1341_v49 = vpop.permute.xlu1 %1340  ;;  %v1442_v51 = vadd.f32 1.0, %v1765_v38  ;;  %v1452_v0 = vmul.f32 %v1444_v59, %v2270_v17 }
 0x526   : > { %1770 = vtanh.f32 %v1353_v55  ;;  %v1350_v50 = vadd.f32 %v1341_v49, %v1326_v41  ;;  %v1449_v58 = vmul.f32 %v1441_v2, %v1425_v24 }
 0x527   : > { %v1450_v57 = vmul.f32 %v1442_v51, %v1426_v18 }
 0x528   : > { %v1354_v60 = vmul.f32 0.5, %v1350_v50  ;;  %1469 = vrot.lane.b32.xlu1 %v1449_v58, %s1846_s19 }
 0x529   : > { %1471 = vrot.lane.b32.xlu0 %v1450_v57, %s1846_s19 }
 0x52a   : > { %1772 = vtanh.f32 %v1354_v60 }
 0x52b   : > { %v1767_v61 = vpop.eup %1766 }
 0x52c   : > { %v1360_v62 = vadd.f32 1.0, %v1767_v61  ;;  %1473 = vrot.lane.b32.xlu1 %v1451_v13, %s1846_s19 }
 0x52d   : > { %1475 = vrot.lane.b32.xlu0 %v1452_v0, %s1846_s19 }
 0x52e   : > { %v1364_v63 = vmul.f32 %v1360_v62, %v1352_v28 }
 0x530   : > { %v1769_v1 = vpop.eup %1768  ;;  %1369 = vst.msk [vmem:[%s2291_s20] sm:$0xff] %vm1368_vm9, %v1364_v63 }
 0x531   : > { %v1363_v3 = vadd.f32 1.0, %v1769_v1 }
 0x533   : > { %v1771_v4 = vpop.eup %1770  ;;  %v1367_v6 = vmul.f32 %v1363_v3, %v1355_v46 }
 0x534   : > { %v1361_v5 = vadd.f32 1.0, %v1771_v4 }
 0x535   : > { %1372 = vst.msk [vmem:[%s2291_s20 + $0x18] sm:$0xff] %vm1368_vm9, %v1367_v6 }
 0x536   : > { %v1365_v7 = vmul.f32 %v1361_v5, %v1353_v55 }
 0x537   : > { %v1773_v8 = vpop.eup %1772 }
 0x538   : > { %1370 = vst.msk [vmem:[%s2291_s20 + $0x8] sm:$0xff] %vm1368_vm9, %v1365_v7  ;;  %v1362_v54 = vadd.f32 1.0, %v1773_v8 }
 0x53a   : > { %v1366_v9 = vmul.f32 %v1362_v54, %v1354_v60 }
 0x53c   : > { %1371 = vst.msk [vmem:[%s2291_s20 + $0x10] sm:$0xff] %vm1368_vm9, %v1366_v9 }
 0x592   : > { %v1466_v10 = vpop.permute.xlu1 %1465 }
 0x593   : > { %v1468_v11 = vpop.permute.xlu0 %1467 }
 0x594   : > { %v1479_v12 = vsel %vm1477_vm10, %v1466_v10, %v1468_v11 }
 0x595   : > { %1633 = vst.msk [vmem:[%s2291_s20 + $0x28] sm:$0xff] %vm1368_vm9, %v1479_v12 }
 0x596   : > { %v1462_v14 = vpop.permute.xlu1 %1461 }
 0x597   : > { %v1464_v15 = vpop.permute.xlu0 %1463 }
 0x598   : > { %v1478_v17 = vsel %vm1477_vm10, %v1462_v14, %v1464_v15 }
 0x599   : > { %1632 = vst.msk [vmem:[%s2291_s20 + $0x20] sm:$0xff] %vm1368_vm9, %v1478_v17 }
 0x59a   : > { %v1470_v24 = vpop.permute.xlu1 %1469 }
 0x59b   : > { %v1472_v18 = vpop.permute.xlu0 %1471 }
 0x59c   : > { %v1480_v19 = vsel %vm1477_vm10, %v1470_v24, %v1472_v18 }
 0x59d   : > { %1634 = vst.msk [vmem:[%s2291_s20 + $0x30] sm:$0xff] %vm1368_vm9, %v1480_v19 }
 0x59e   : > { %v1474_v20 = vpop.permute.xlu1 %1473 }
 0x59f   : > { %v1476_v16 = vpop.permute.xlu0 %1475 }
 0x5a0   : > { %v1481_v22 = vsel %vm1477_vm10, %v1474_v20, %v1476_v16 }
 0x5a1   : > { %1635 = vst.msk [vmem:[%s2291_s20 + $0x38] sm:$0xff] %vm1368_vm9, %v1481_v22 }
 0x5a2   : > { %1787 = shalt.err (!%p1784_p3)
}
 0x5a3   : > { %s1788_s16 = scalar_lea.hbm %s2315_s8, 1024  ;;  %s1792_s18 = scalar_lea.hbm %s2371_s7, 2048 }
 0x5a4   : > { %p1789_p4 = scmp.ne.s32.totalorder %s2315_s8, %s1788_s16  ;;  %p1793_p9 = scmp.lt.s32.totalorder %s2315_s8, %s2371_s7 }
 0x5a5   : > { %p1794_p10 = scmp.lt.s32.totalorder %s1792_s18, %s1788_s16 }
 0x5a6   : > { %p1790_p7 = pnand %p1789_p4, %p1928_p5 }
 0x5a7   : > { %p1795_p11 = por %p1794_p10, %p1793_p9 }
 0x5a8   : > { %p1791_p8 = pneg %p1790_p7 }
 0x5aa   : > { %p1796_p12 = pnand %p1795_p11, %p1791_p8 }
 0x5ac   : > { %1799 = shalt.err (!%p1796_p12)
}
 0x5ad   : > { %s1848_s21 = smov 128   ;;  %s1849_s29 = smov 8  }
 0x5ae   : > { %1667 = dma.vmem_to_hbm [thread:$0]  (%p1928_p5), %s2317_s23, 1024, %s2315_s8, %s2324_s28, %s1848_s21, %s1848_s21, %s1849_s29  }
 0x5af PF: > { %p1673_p13 = scmp.ge.s32.totalorder %s1834_s27, 2  ;;  %s1521_s9 = sand.u32 1, %s1822_s24  }
 0x5b0   : > { %s1522_s13 = scalar_lea.sflag [#allocation3], %s1521_s9 }
 0x5b1   : > { %p1670_p0 = pnand %p1673_p13, %p1932_p6 }
 0x5b3   : > { %p1671_p1 = pneg %p1670_p0 }
 0x5b5   : > { %1817 = dma.done.wait (%p1671_p1), %s1522_s13, 1024  }
 0x5b6   : > { %1819 = vsyncadd (%p1671_p1), %s1522_s13, 4294966272  ;;  %p17_p2 = scmp.ge.s32.totalorder %s1915_s30, 4   ;;  %s2374_s24 = smov %s1826_s25 }
 0x5b7   : > { %s2375_s25 = smov %s1830_s26  ;;  %s2376_s26 = smov %s1926_s10 }
 0x5b8   : > { %s2377_s27 = smov %s1915_s30  ;;  %19 = sbr.rel (!%p17_p2) target bundleno = 3 (0x3), region = 88 }
 0x5bd   :  { %1527 = vsyncpa [#allocation3], 1 }
 0x5be   :  { %1529 = vsyncpa [#allocation3 + $0x1], 1 }

</bundles_post_ra>
